<compile_context>
chip_gen: v7x
topology: tpu7x:2x2x1
jax: 0.10.0
libtpu: 0.0.40
codegen_flags: <defaults>
</compile_context>

<pallas_src>
import jax
import jax.numpy as jnp
from jax.experimental import pallas as pl
from jax.experimental.pallas import tpu as pltpu


def _round_up(x: int, m: int) -> int:
    return (x + m - 1) // m * m


def _pool_dense_kernel(x_ref, inv_ref, w_ref, b_ref, o_ref):
    """Fused graph average-pooling + Linear.

    x_ref:   (TB, N, Fp)  node features, invalid/padded nodes are zero
    inv_ref: (TB, 1)      1 / num_nodes per graph
    w_ref:   (Fp, Dp)     weight (rows >= feature_dim are zero)
    b_ref:   (1, Dp)      bias
    o_ref:   (TB, Dp)     output
    """
    pooled = jnp.sum(x_ref[...], axis=1) * inv_ref[...]            # (TB, Fp) f32
    y = jnp.dot(pooled, w_ref[...], preferred_element_type=jnp.float32)
    y = y + b_ref[...]                                             # f32 epilogue
    o_ref[...] = y.astype(o_ref.dtype)


class DGLGINContextPredPallas:
    """JAX/Pallas equivalent of DGL_GIN_ContextPred's pool + dense head (eval)."""

    def __init__(self, feature_dim=300, predictor_dim=256, dropout=0.1,
                 pooling="average", key=None):
        if pooling != "average":
            # TODO(synk): 'max' pooling (masked max over nodes) not implemented.
            raise NotImplementedError("only 'average' pooling is implemented")
        self.feature_dim = feature_dim
        self.predictor_dim = predictor_dim
        # Dropout is identity in eval mode.

        key = jax.random.PRNGKey(0) if key is None else key
        kw, kb = jax.random.split(key)
        bound = 1.0 / (feature_dim ** 0.5)
        # Stored as (in, out) so the kernel computes x @ W + b, matching
        # PyTorch's x @ W_pt.T + b with W_pt of shape (out, in).
        w = jax.random.uniform(kw, (feature_dim, predictor_dim),
                               minval=-bound, maxval=bound, dtype=jnp.float32)
        b = jax.random.uniform(kb, (predictor_dim,),
                               minval=-bound, maxval=bound, dtype=jnp.float32)
        self.w = w
        self.b = b

        # Lane-aligned padded copies built once (not per call).
        Fp = _round_up(feature_dim, 128)
        Dp = _round_up(predictor_dim, 128)
        self.w_pad = (jnp.zeros((Fp, Dp), jnp.float32)
                      .at[:feature_dim, :predictor_dim].set(w))
        self.b_pad = jnp.zeros((1, Dp), jnp.float32).at[0, :predictor_dim].set(b)

    def __call__(self, node_feats, node_counts):
        """node_feats: (B, N, feature_dim) dense-padded per-node GNN features.
        node_counts: (B,) number of valid nodes per graph."""
        B, N, F = node_feats.shape
        assert F == self.feature_dim
        Fp, Dp = self.w_pad.shape

        # Zero invalid node rows so in-kernel sum pooling is exact.
        valid = jnp.arange(N)[None, :] < node_counts[:, None]
        x = jnp.where(valid[:, :, None], node_feats, 0.0).astype(jnp.float32)

        # Batch tiling: whole (padded) batch in one block when small, else
        # 128-row tiles sharded across a "parallel" grid axis.
        if B <= 128:
            Bp = max(_round_up(B, 8), 8)
            TB = Bp
        else:
            Bp = _round_up(B, 128)
            TB = 128
        Np = _round_up(N, 8)
        x = jnp.pad(x, ((0, Bp - B), (0, Np - N), (0, Fp - F)))

        inv = 1.0 / jnp.maximum(node_counts, 1).astype(jnp.float32)
        inv = jnp.pad(inv, (0, Bp - B)).reshape(Bp, 1)

        cost = pl.CostEstimate(
            flops=2 * Bp * Fp * Dp + Bp * Np * Fp,
            transcendentals=0,
            bytes_accessed=4 * (Bp * Np * Fp + Fp * Dp + Dp + Bp * Dp + Bp),
        )

        out = pl.pallas_call(
            _pool_dense_kernel,
            out_shape=jax.ShapeDtypeStruct((Bp, Dp), jnp.float32),
            grid=(Bp // TB,),
            in_specs=[
                pl.BlockSpec((TB, Np, Fp), lambda i: (i, 0, 0)),
                pl.BlockSpec((TB, 1), lambda i: (i, 0)),
                pl.BlockSpec((Fp, Dp), lambda i: (0, 0)),   # resident weight
                pl.BlockSpec((1, Dp), lambda i: (0, 0)),    # resident bias
            ],
            out_specs=pl.BlockSpec((TB, Dp), lambda i: (i, 0)),
            compiler_params=pltpu.CompilerParams(
                dimension_semantics=("parallel",),
            ),
            cost_estimate=cost,
        )(x, inv, self.w_pad, self.b_pad)

        out = out[:B, :self.predictor_dim]
        return jnp.squeeze(out)   # matches torch.squeeze


if __name__ == "__main__":
    key = jax.random.PRNGKey(0)
    key, kx, kp = jax.random.split(key, 3)

    # Small shapes consistent with the module: 4 graphs, up to 16 nodes each,
    # GNN node-feature dim 300, predictor dim 256.
    B, N = 4, 16
    feature_dim, predictor_dim = 300, 256

    node_counts = jnp.array([16, 11, 7, 13], dtype=jnp.int32)
    # Stand-in for the pretrained GIN's per-node output features.
    node_feats = jax.random.normal(kx, (B, N, feature_dim), dtype=jnp.float32)

    model = DGLGINContextPredPallas(feature_dim, predictor_dim, dropout=0.1,
                                    pooling="average", key=kp)
    out = jax.block_until_ready(model(node_feats, node_counts))

    # Pure-JAX reference: masked average pooling + Linear (+ squeeze).
    mask = (jnp.arange(N)[None, :] < node_counts[:, None]).astype(jnp.float32)
    pooled = (node_feats * mask[:, :, None]).sum(axis=1)
    pooled = pooled / node_counts[:, None].astype(jnp.float32)
    ref = jnp.squeeze(pooled @ model.w + model.b)

    assert out.shape == (B, predictor_dim), out.shape
    assert jnp.allclose(out, ref, atol=1e-4, rtol=1e-5), \
        float(jnp.abs(out - ref).max())

    print("KERNEL_OK")
</pallas_src>

<mosaic_0001>
module attributes {stable_mosaic.version = 11 : i64} {
  func.func @_pool_dense_kernel(%arg0: i32, %arg1: memref<8x16x384xf32, #tpu.memory_space<vmem>>, %arg2: memref<8x1xf32, #tpu.memory_space<vmem>>, %arg3: memref<384x256xf32, #tpu.memory_space<vmem>>, %arg4: memref<1x256xf32, #tpu.memory_space<vmem>>, %arg5: memref<8x256xf32, #tpu.memory_space<vmem>>) attributes {dimension_semantics = [#tpu.dimension_semantics<parallel>], iteration_bounds = array<i64: 1>, scalar_prefetch = 0 : i64, scratch_operands = 0 : i64, tpu.core_type = #tpu.core_type<tc>, window_params = [{transform_indices = @transform_0, window_bounds = array<i64: 8, 16, 384>}, {transform_indices = @transform_1, window_bounds = array<i64: 8, 1>}, {pipeline_mode = #tpu.pipeline_mode<synchronous>, transform_indices = @transform_2, window_bounds = array<i64: 384, 256>}, {pipeline_mode = #tpu.pipeline_mode<synchronous>, transform_indices = @transform_3, window_bounds = array<i64: 1, 256>}, {transform_indices = @transform_4, window_bounds = array<i64: 8, 256>}]} {
    %c0 = arith.constant 0 : index
    %c0_0 = arith.constant 0 : index
    %c0_1 = arith.constant 0 : index
    %0 = vector.load %arg1[%c0, %c0_0, %c0_1] : memref<8x16x384xf32, #tpu.memory_space<vmem>>, vector<8x16x384xf32>
    %cst = arith.constant dense<0.000000e+00> : vector<8x384xf32>
    %1 = vector.multi_reduction <add>, %0, %cst [1] : vector<8x16x384xf32> to vector<8x384xf32>
    %c0_2 = arith.constant 0 : index
    %c0_3 = arith.constant 0 : index
    %2 = vector.load %arg2[%c0_2, %c0_3] : memref<8x1xf32, #tpu.memory_space<vmem>>, vector<8x1xf32>
    %3 = vector.broadcast %2 : vector<8x1xf32> to vector<8x384xf32>
    %4 = arith.mulf %1, %3 : vector<8x384xf32>
    %c0_4 = arith.constant 0 : index
    %c0_5 = arith.constant 0 : index
    %5 = vector.load %arg3[%c0_4, %c0_5] : memref<384x256xf32, #tpu.memory_space<vmem>>, vector<384x256xf32>
    %cst_6 = arith.constant dense<0.000000e+00> : vector<8x256xf32>
    %6 = tpu.matmul %4, %5, %cst_6 {dimension_numbers = #tpu.dot_dimension_numbers<[1], [0], [0], [1], [0, 0, 1, 1], [], []>} : vector<8x384xf32>, vector<384x256xf32>, vector<8x256xf32> -> vector<8x256xf32>
    %c0_7 = arith.constant 0 : index
    %c0_8 = arith.constant 0 : index
    %7 = vector.load %arg4[%c0_7, %c0_8] : memref<1x256xf32, #tpu.memory_space<vmem>>, vector<1x256xf32>
    %8 = vector.broadcast %7 : vector<1x256xf32> to vector<8x256xf32>
    %9 = arith.addf %6, %8 : vector<8x256xf32>
    %c0_9 = arith.constant 0 : index
    %c0_10 = arith.constant 0 : index
    %10 = vector.load %arg5[%c0_9, %c0_10] : memref<8x256xf32, #tpu.memory_space<vmem>>, vector<8x256xf32>
    tpu.vector_store %arg5[%c0_9, %c0_10], %9 {strides = array<i32>} : memref<8x256xf32, #tpu.memory_space<vmem>>, vector<8x256xf32>,
    return
  }
  func.func @transform_0(%arg0: i32) -> (i32, i32, i32) {
    %c0_i32 = arith.constant 0 : i32
    %c0_i32_0 = arith.constant 0 : i32
    %c0_i32_1 = arith.constant 0 : i32
    return %arg0, %c0_i32, %c0_i32_0 : i32, i32, i32
  }
  func.func @transform_1(%arg0: i32) -> (i32, i32) {
    %c0_i32 = arith.constant 0 : i32
    %c0_i32_0 = arith.constant 0 : i32
    return %arg0, %c0_i32 : i32, i32
  }
  func.func @transform_2(%arg0: i32) -> (i32, i32) {
    %c0_i32 = arith.constant 0 : i32
    %c0_i32_0 = arith.constant 0 : i32
    %c0_i32_1 = arith.constant 0 : i32
    return %c0_i32, %c0_i32_0 : i32, i32
  }
  func.func @transform_3(%arg0: i32) -> (i32, i32) {
    %c0_i32 = arith.constant 0 : i32
    %c0_i32_0 = arith.constant 0 : i32
    %c0_i32_1 = arith.constant 0 : i32
    return %c0_i32, %c0_i32_0 : i32, i32
  }
  func.func @transform_4(%arg0: i32) -> (i32, i32) {
    %c0_i32 = arith.constant 0 : i32
    %c0_i32_0 = arith.constant 0 : i32
    return %arg0, %c0_i32 : i32, i32
  }
}

</mosaic_0001>

<bundles_post_ra>
// kernel: tpu_custom_call.1
= control target key start
LH: loop header
LB: loop body
LE: loop exit
PB: predicated region body
PF: predicated region fallthrough
CT: control target
= control target key end

     0   :  { %9 = vsyncpa [#allocation3], 0  ;;  %s968_s0 = inlined_call_operand.hbm [shape: f32[8,16,384], index: 0, kind: input, shape index: {}]   ;;  %s969_s1 = inlined_call_operand.vmem [shape: f32[8,1], index: 1, kind: input, shape index: {}]   ;;  %s970_s2 = inlined_call_operand.hbm [shape: f32[384,256], index: 2, kind: input, shape index: {}]   ;;  %s971_s3 = inlined_call_operand.vmem [shape: f32[1,256], index: 3, kind: input, shape index: {}]   ;;  %s972_s4 = inlined_call_operand.hbm [shape: f32[8,256], index: 4, kind: output, shape index: {}]  }
   0x1   :  { %10 = vsyncpa [#allocation6], 0 }
   0x2   :  { %11 = vsyncpa [#allocation4], 0  ;;  %s832_s15 = smov [#allocation2]   ;;  %s760_s19 = scalar_lea.hbm %s968_s0, 6144 }
   0x3   :  { %s17_s16 = sshll.u32 %s832_s15, 4  ;;  %p761_p0 = scmp.ne.s32.totalorder %s968_s0, %s760_s19  ;;  %s18_s16 = int_to_ptr.vmem [resolvable:$true] %s17_s16 }
   0x4   :  { %p764_p1 = scmp.lt.u32.totalorder %s760_s19, %s968_s0 }
   0x6   :  { %p766_p2 = pnand %p764_p1, %p761_p0 }
   0x8   :  { %769 = shalt.err (!%p766_p2)
}
   0x9   :  { %s770_s24 = scalar_lea.vmem %s18_s16, 6144  ;;  %p775_p4 = scmp.lt.s32.totalorder %s18_s16, %s18_s16 }
   0xa   :  { %p771_p3 = scmp.ne.s32.totalorder %s18_s16, %s770_s24  ;;  %p776_p5 = scmp.lt.s32.totalorder %s770_s24, %s770_s24 }
   0xc   :  { %p777_p6 = por %p776_p5, %p775_p4 }
   0xe   :  { %p778_p7 = pnand %p777_p6, %p771_p3 }
  0x10   :  { %781 = shalt.err (!%p778_p7)
}
  0x11   :  { %s833_s25 = smov 384   ;;  %s834_s26 = smov 24  }
  0x12   :  { %23 = dma.hbm_to_vmem [thread:$0]  %s968_s0, 6144, %s18_s16, [#allocation3], %s833_s25, %s833_s25, %s834_s26  }
  0x13   :  { %s835_s29 = smov [#allocation5]   ;;  %s782_s7 = scalar_lea.hbm %s970_s2, 12288 }
  0x14   :  { %s31_s30 = sshll.u32 %s835_s29, 4  ;;  %p783_p8 = scmp.ne.s32.totalorder %s970_s2, %s782_s7  ;;  %s32_s30 = int_to_ptr.vmem [resolvable:$true] %s31_s30 }
  0x15   :  { %p786_p9 = scmp.lt.u32.totalorder %s782_s7, %s970_s2 }
  0x17   :  { %p788_p10 = pnand %p786_p9, %p783_p8 }
  0x19   :  { %791 = shalt.err (!%p788_p10)
}
  0x1a   :  { %s792_s12 = scalar_lea.vmem %s32_s30, 12288  ;;  %p797_p12 = scmp.lt.s32.totalorder %s32_s30, %s32_s30 }
  0x1b   :  { %p793_p11 = scmp.ne.s32.totalorder %s32_s30, %s792_s12  ;;  %p798_p13 = scmp.lt.s32.totalorder %s792_s12, %s792_s12 }
  0x1d   :  { %p799_p0 = por %p798_p13, %p797_p12 }
  0x1f   :  { %p800_p1 = pnand %p799_p0, %p793_p11 }
  0x21   :  { %803 = shalt.err (!%p800_p1)
}
  0x22   :  { %s836_s0 = smov 256   ;;  %s837_s13 = smov 16  }
  0x23   :  { %37 = dma.hbm_to_vmem [thread:$0]  %s970_s2, 12288, %s32_s30, [#allocation6], %s836_s0, %s836_s0, %s837_s13  }
  0x24   :  { %826 = dma.done.wait [#allocation3], 6144  }
  0x25   :  { %827 = vsyncadd [#allocation3], 4294961152 }
  0x26   :  { %828 = dma.done.wait [#allocation6], 12288  }
  0x27   :  { %829 = vsyncadd [#allocation6], 4294955008  ;;  %v838_v0 = vmov 0   ;;  %v262_v1 = vld [vmem:[%s969_s1] sm:$0xff]  ;;  %v307_v2 = vld [vmem:[#allocation5 + $0x8] sm:$0xff]  ;;  %v839_v8 = vmov 0.0  }
  0x28   :  { %759 = vset.pattern.permute.xlu0 %v838_v0  ;;  %v309_v3 = vld [vmem:[#allocation5 + $0x18] sm:$0xff]  ;;  %v306_v5 = vld [vmem:[#allocation5] sm:$0xff]  ;;  %v308_v6 = vld [vmem:[#allocation5 + $0x10] sm:$0xff]  ;;  %625 = vmatprep.mubr.f32.mxu0 %v839_v8  ;;  %vm439_vm0 = vcmask 1041409   ;;  %vm442_vm1 = vcmask 1042434   ;;  %vm445_vm2 = vcmask 1043459  }
  0x29   :  { %265 = vperm.xlu0 %759, %v262_v1   ;;  %v650_v4 = vpack.c.bf16 %v309_v3, %v307_v2  ;;  %v311_v7 = vld [vmem:[#allocation5 + $0x28] sm:$0xff]  ;;  %v652_v9 = vpack.c.bf16 %v308_v6, %v306_v5  ;;  %v313_v10 = vld [vmem:[#allocation5 + $0x38] sm:$0xff]  ;;  %v310_v11 = vld [vmem:[#allocation5 + $0x20] sm:$0xff]  ;;  %vm448_vm3 = vcmask 1044484   ;;  %vm451_vm4 = vcmask 1045509   ;;  %s840_s18 = smov [#allocation7]  }
  0x2a   :  { %v312_v12 = vld [vmem:[#allocation5 + $0x30] sm:$0xff]  ;;  %v654_v13 = vpack.c.bf16 %v313_v10, %v311_v7  ;;  %v315_v14 = vld [vmem:[#allocation5 + $0x48] sm:$0xff]  ;;  %v317_v15 = vld [vmem:[#allocation5 + $0x58] sm:$0xff]  ;;  %vm454_vm5 = vcmask 1046534   ;;  %vm457_vm6 = vcmask 1047559   ;;  %s640_s19 = sshll.u32 %s840_s18, 4  ;;  %s641_s19 = int_to_ptr.vmem [resolvable:$true] %s640_s19 }
  0x2b   :  { %651 = vmatprep.subr.bf16.mxu1 %v650_v4  ;;  %v656_v16 = vpack.c.bf16 %v312_v12, %v310_v11  ;;  %v658_v17 = vpack.c.bf16 %v317_v15, %v315_v14  ;;  %v314_v18 = vld [vmem:[#allocation5 + $0x40] sm:$0xff]  ;;  %v316_v19 = vld [vmem:[#allocation5 + $0x50] sm:$0xff]  ;;  %v319_v20 = vld [vmem:[#allocation5 + $0x68] sm:$0xff]  ;;  %s804_s20 = scalar_lea.vmem %s641_s19, 256  ;;  %p809_p3 = scmp.lt.s32.totalorder %s641_s19, %s641_s19 }
  0x2c   :  { %653 = vmatpush1.bf16.msra.mxu1 %v652_v9  ;;  %v321_v21 = vld [vmem:[#allocation5 + $0x78] sm:$0xff]  ;;  %v660_v22 = vpack.c.bf16 %v316_v19, %v314_v18  ;;  %v318_v24 = vld [vmem:[#allocation5 + $0x60] sm:$0xff]  ;;  %v320_v25 = vld [vmem:[#allocation5 + $0x70] sm:$0xff]  ;;  %p805_p2 = scmp.ne.s32.totalorder %s641_s19, %s804_s20  ;;  %p810_p4 = scmp.lt.s32.totalorder %s804_s20, %s804_s20 }
  0x2d   :  { %655 = vmatprep.subr.bf16.mxu1 %v654_v13  ;;  %v662_v23 = vpack.c.bf16 %v321_v21, %v319_v20  ;;  %v323_v26 = vld [vmem:[#allocation5 + $0x88] sm:$0xff]  ;;  %v325_v27 = vld [vmem:[#allocation5 + $0x98] sm:$0xff]  ;;  %v664_v30 = vpack.c.bf16 %v320_v25, %v318_v24  ;;  %v370_v32 = vld [vmem:[#allocation5 + $0x200] sm:$0xff] }
  0x2e   :  { %v371_v28 = vld [vmem:[#allocation5 + $0x208] sm:$0xff]  ;;  %v373_v29 = vld [vmem:[#allocation5 + $0x218] sm:$0xff]  ;;  %v372_v33 = vld [vmem:[#allocation5 + $0x210] sm:$0xff]  ;;  %v666_v34 = vpack.c.bf16 %v325_v27, %v323_v26  ;;  %p811_p5 = por %p810_p4, %p809_p3 }
  0x2f   :  { %v714_v31 = vpack.c.bf16 %v373_v29, %v371_v28  ;;  %v322_v35 = vld [vmem:[#allocation5 + $0x80] sm:$0xff]  ;;  %v324_v36 = vld [vmem:[#allocation5 + $0x90] sm:$0xff]  ;;  %v716_v37 = vpack.c.bf16 %v372_v33, %v370_v32  ;;  %v375_v38 = vld [vmem:[#allocation5 + $0x228] sm:$0xff] }
  0x30   :  { %657 = vmatpush1.bf16.msra.mxu1 %v656_v16  ;;  %v327_v39 = vld [vmem:[#allocation5 + $0xa8] sm:$0xff]  ;;  %v329_v40 = vld [vmem:[#allocation5 + $0xb8] sm:$0xff]  ;;  %v374_v43 = vld [vmem:[#allocation5 + $0x220] sm:$0xff]  ;;  %v668_v45 = vpack.c.bf16 %v324_v36, %v322_v35  ;;  %p812_p6 = pnand %p811_p5, %p805_p2 }
  0x31   :  { %659 = vmatprep.subr.bf16.mxu1 %v658_v17  ;;  %715 = vmatprep.subr.bf16.mxu0 %v714_v31  ;;  %v377_v41 = vld [vmem:[#allocation5 + $0x238] sm:$0xff]  ;;  %v376_v44 = vld [vmem:[#allocation5 + $0x230] sm:$0xff]  ;;  %v379_v47 = vld [vmem:[#allocation5 + $0x248] sm:$0xff]  ;;  %v670_v49 = vpack.c.bf16 %v329_v40, %v327_v39 }
  0x32   :  { %717 = vmatpush1.bf16.msra.mxu0 %v716_v37  ;;  %v718_v42 = vpack.c.bf16 %v377_v41, %v375_v38  ;;  %v720_v46 = vpack.c.bf16 %v376_v44, %v374_v43  ;;  %v381_v48 = vld [vmem:[#allocation5 + $0x258] sm:$0xff]  ;;  %v326_v50 = vld [vmem:[#allocation5 + $0xa0] sm:$0xff]  ;;  %v328_v51 = vld [vmem:[#allocation5 + $0xb0] sm:$0xff] }
  0x33   :  { %v722_v52 = vpack.c.bf16 %v381_v48, %v379_v47  ;;  %v378_v53 = vld [vmem:[#allocation5 + $0x240] sm:$0xff]  ;;  %v331_v54 = vld [vmem:[#allocation5 + $0xc8] sm:$0xff]  ;;  %v333_v55 = vld [vmem:[#allocation5 + $0xd8] sm:$0xff]  ;;  %v672_v60 = vpack.c.bf16 %v328_v51, %v326_v50 }
  0x34   :  { %661 = vmatpush1.bf16.msra.mxu1 %v660_v22  ;;  %719 = vmatprep.subr.bf16.mxu0 %v718_v42  ;;  %v380_v56 = vld [vmem:[#allocation5 + $0x250] sm:$0xff]  ;;  %v383_v58 = vld [vmem:[#allocation5 + $0x268] sm:$0xff]  ;;  %v385_v59 = vld [vmem:[#allocation5 + $0x278] sm:$0xff]  ;;  %v674_v0 = vpack.c.bf16 %v333_v55, %v331_v54 }
  0x35   :  { %663 = vmatprep.subr.bf16.mxu1 %v662_v23  ;;  %v724_v57 = vpack.c.bf16 %v380_v56, %v378_v53  ;;  %v726_v61 = vpack.c.bf16 %v385_v59, %v383_v58  ;;  %v382_v62 = vld [vmem:[#allocation5 + $0x260] sm:$0xff]  ;;  %v384_v63 = vld [vmem:[#allocation5 + $0x270] sm:$0xff]  ;;  %v387_v3 = vld [vmem:[#allocation5 + $0x288] sm:$0xff] }
  0x36   :  { %721 = vmatpush1.bf16.msra.mxu0 %v720_v46  ;;  %v330_v1 = vld [vmem:[#allocation5 + $0xc0] sm:$0xff]  ;;  %v332_v2 = vld [vmem:[#allocation5 + $0xd0] sm:$0xff]  ;;  %v335_v4 = vld [vmem:[#allocation5 + $0xe8] sm:$0xff]  ;;  %v728_v7 = vpack.c.bf16 %v384_v63, %v382_v62 }
  0x37   :  { %723 = vmatprep.subr.bf16.mxu0 %v722_v52  ;;  %v337_v5 = vld [vmem:[#allocation5 + $0xf8] sm:$0xff]  ;;  %v676_v8 = vpack.c.bf16 %v332_v2, %v330_v1  ;;  %v334_v9 = vld [vmem:[#allocation5 + $0xe0] sm:$0xff]  ;;  %v388_v12 = vld [vmem:[#allocation5 + $0x290] sm:$0xff] }
  0x38   :  { %665 = vmatpush1.bf16.msra.mxu1 %v664_v30  ;;  %v389_v6 = vld [vmem:[#allocation5 + $0x298] sm:$0xff]  ;;  %v386_v11 = vld [vmem:[#allocation5 + $0x280] sm:$0xff]  ;;  %v678_v13 = vpack.c.bf16 %v337_v5, %v335_v4  ;;  %v336_v14 = vld [vmem:[#allocation5 + $0xf0] sm:$0xff] }
  0x39   :  { %667 = vmatprep.subr.bf16.mxu1 %v666_v34  ;;  %v730_v10 = vpack.c.bf16 %v389_v6, %v387_v3  ;;  %v391_v15 = vld [vmem:[#allocation5 + $0x2a8] sm:$0xff]  ;;  %v393_v16 = vld [vmem:[#allocation5 + $0x2b8] sm:$0xff]  ;;  %v732_v19 = vpack.c.bf16 %v388_v12, %v386_v11  ;;  %v680_v20 = vpack.c.bf16 %v336_v14, %v334_v9  ;;  %v338_v21 = vld [vmem:[#allocation5 + $0x100] sm:$0xff] }
  0x3a   :  { %725 = vmatpush1.bf16.msra.mxu0 %v724_v57  ;;  %v339_v17 = vld [vmem:[#allocation5 + $0x108] sm:$0xff]  ;;  %v341_v18 = vld [vmem:[#allocation5 + $0x118] sm:$0xff]  ;;  %v734_v22 = vpack.c.bf16 %v393_v16, %v391_v15  ;;  %v390_v23 = vld [vmem:[#allocation5 + $0x2a0] sm:$0xff] }
  0x3b   :  { %727 = vmatprep.subr.bf16.mxu0 %v726_v61  ;;  %v392_v24 = vld [vmem:[#allocation5 + $0x2b0] sm:$0xff]  ;;  %v682_v25 = vpack.c.bf16 %v341_v18, %v339_v17  ;;  %v395_v27 = vld [vmem:[#allocation5 + $0x2c8] sm:$0xff]  ;;  %v397_v28 = vld [vmem:[#allocation5 + $0x2d8] sm:$0xff] }
  0x3c   :  { %669 = vmatpush1.bf16.msra.mxu1 %v668_v45  ;;  %v340_v26 = vld [vmem:[#allocation5 + $0x110] sm:$0xff]  ;;  %v343_v29 = vld [vmem:[#allocation5 + $0x128] sm:$0xff]  ;;  %v345_v30 = vld [vmem:[#allocation5 + $0x138] sm:$0xff]  ;;  %v736_v31 = vpack.c.bf16 %v392_v24, %v390_v23  ;;  %v738_v34 = vpack.c.bf16 %v397_v28, %v395_v27 }
  0x3d   :  { %671 = vmatprep.subr.bf16.mxu1 %v670_v49  ;;  %v684_v32 = vpack.c.bf16 %v340_v26, %v338_v21  ;;  %v342_v33 = vld [vmem:[#allocation5 + $0x120] sm:$0xff]  ;;  %v396_v36 = vld [vmem:[#allocation5 + $0x2d0] sm:$0xff]  ;;  %v686_v37 = vpack.c.bf16 %v345_v30, %v343_v29  ;;  %v399_v39 = vld [vmem:[#allocation5 + $0x2e8] sm:$0xff] }
  0x3e   :  { %729 = vmatpush1.bf16.msra.mxu0 %v728_v7  ;;  %v394_v35 = vld [vmem:[#allocation5 + $0x2c0] sm:$0xff]  ;;  %v344_v38 = vld [vmem:[#allocation5 + $0x130] sm:$0xff]  ;;  %v401_v40 = vld [vmem:[#allocation5 + $0x2f8] sm:$0xff] }
  0x3f   :  { %731 = vmatprep.subr.bf16.mxu0 %v730_v10  ;;  %v347_v41 = vld [vmem:[#allocation5 + $0x148] sm:$0xff]  ;;  %v349_v42 = vld [vmem:[#allocation5 + $0x158] sm:$0xff]  ;;  %v740_v43 = vpack.c.bf16 %v396_v36, %v394_v35  ;;  %v688_v44 = vpack.c.bf16 %v344_v38, %v342_v33  ;;  %v742_v45 = vpack.c.bf16 %v401_v40, %v399_v39  ;;  %v398_v46 = vld [vmem:[#allocation5 + $0x2e0] sm:$0xff] }
  0x40   :  { %673 = vmatpush1.bf16.msra.mxu1 %v672_v60  ;;  %v400_v47 = vld [vmem:[#allocation5 + $0x2f0] sm:$0xff]  ;;  %v690_v48 = vpack.c.bf16 %v349_v42, %v347_v41  ;;  %v346_v49 = vld [vmem:[#allocation5 + $0x140] sm:$0xff]  ;;  %v351_v51 = vld [vmem:[#allocation5 + $0x168] sm:$0xff] }
  0x41   :  { %675 = vmatprep.subr.bf16.mxu1 %v674_v0  ;;  %v348_v50 = vld [vmem:[#allocation5 + $0x150] sm:$0xff]  ;;  %v353_v52 = vld [vmem:[#allocation5 + $0x178] sm:$0xff]  ;;  %v744_v53 = vpack.c.bf16 %v400_v47, %v398_v46  ;;  %v350_v56 = vld [vmem:[#allocation5 + $0x160] sm:$0xff] }
  0x42   :  { %733 = vmatpush1.bf16.msra.mxu0 %v732_v19  ;;  %v692_v54 = vpack.c.bf16 %v348_v50, %v346_v49  ;;  %v694_v55 = vpack.c.bf16 %v353_v52, %v351_v51  ;;  %v352_v57 = vld [vmem:[#allocation5 + $0x170] sm:$0xff]  ;;  %v355_v58 = vld [vmem:[#allocation5 + $0x188] sm:$0xff]  ;;  %v357_v59 = vld [vmem:[#allocation5 + $0x198] sm:$0xff] }
  0x43   :  { %735 = vmatprep.subr.bf16.mxu0 %v734_v22  ;;  %v696_v60 = vpack.c.bf16 %v352_v57, %v350_v56  ;;  %v698_v61 = vpack.c.bf16 %v357_v59, %v355_v58  ;;  %v354_v62 = vld [vmem:[#allocation5 + $0x180] sm:$0xff]  ;;  %v356_v63 = vld [vmem:[#allocation5 + $0x190] sm:$0xff]  ;;  %v359_v0 = vld [vmem:[#allocation5 + $0x1a8] sm:$0xff] }
  0x44   :  { %677 = vmatpush1.bf16.msra.mxu1 %v676_v8  ;;  %v361_v1 = vld [vmem:[#allocation5 + $0x1b8] sm:$0xff]  ;;  %v700_v2 = vpack.c.bf16 %v356_v63, %v354_v62  ;;  %v358_v4 = vld [vmem:[#allocation5 + $0x1a0] sm:$0xff]  ;;  %v360_v5 = vld [vmem:[#allocation5 + $0x1b0] sm:$0xff] }
  0x45   :  { %679 = vmatprep.subr.bf16.mxu1 %v678_v13  ;;  %v702_v3 = vpack.c.bf16 %v361_v1, %v359_v0  ;;  %v363_v6 = vld [vmem:[#allocation5 + $0x1c8] sm:$0xff]  ;;  %v365_v7 = vld [vmem:[#allocation5 + $0x1d8] sm:$0xff]  ;;  %v704_v8 = vpack.c.bf16 %v360_v5, %v358_v4  ;;  %v362_v10 = vld [vmem:[#allocation5 + $0x1c0] sm:$0xff] }
  0x46   :  { %737 = vmatpush1.bf16.msra.mxu0 %v736_v31  ;;  %v706_v9 = vpack.c.bf16 %v365_v7, %v363_v6  ;;  %v364_v11 = vld [vmem:[#allocation5 + $0x1d0] sm:$0xff]  ;;  %v367_v12 = vld [vmem:[#allocation5 + $0x1e8] sm:$0xff]  ;;  %v369_v13 = vld [vmem:[#allocation5 + $0x1f8] sm:$0xff] }
  0x47   :  { %739 = vmatprep.subr.bf16.mxu0 %v738_v34  ;;  %v708_v14 = vpack.c.bf16 %v364_v11, %v362_v10  ;;  %v710_v15 = vpack.c.bf16 %v369_v13, %v367_v12  ;;  %v366_v16 = vld [vmem:[#allocation5 + $0x1e0] sm:$0xff]  ;;  %v368_v17 = vld [vmem:[#allocation5 + $0x1f0] sm:$0xff]  ;;  %v47_v19 = vld [vmem:[#allocation2 + $0x8] sm:$0xff] }
  0x48   :  { %681 = vmatpush1.bf16.msra.mxu1 %v680_v20  ;;  %v712_v18 = vpack.c.bf16 %v368_v17, %v366_v16  ;;  %v50_v20 = vld [vmem:[#allocation2 + $0x20] sm:$0xff]  ;;  %v53_v21 = vld [vmem:[#allocation2 + $0x38] sm:$0xff]  ;;  %v56_v22 = vld [vmem:[#allocation2 + $0x50] sm:$0xff] }
  0x49   :  { %683 = vmatprep.subr.bf16.mxu1 %v682_v25  ;;  %v59_v23 = vld [vmem:[#allocation2 + $0x68] sm:$0xff]  ;;  %v62_v24 = vld [vmem:[#allocation2 + $0x80] sm:$0xff]  ;;  %v65_v25 = vld [vmem:[#allocation2 + $0x98] sm:$0xff]  ;;  %v101_v31 = vadd.f32 %v50_v20, %v47_v19 }
  0x4a   :  { %741 = vmatpush1.bf16.msra.mxu0 %v740_v43  ;;  %v68_v26 = vld [vmem:[#allocation2 + $0xb0] sm:$0xff]  ;;  %v71_v27 = vld [vmem:[#allocation2 + $0xc8] sm:$0xff]  ;;  %v74_v28 = vld [vmem:[#allocation2 + $0xe0] sm:$0xff]  ;;  %v143_v33 = vadd.f32 %v62_v24, %v59_v23 }
  0x4b   :  { %743 = vmatprep.subr.bf16.mxu0 %v742_v45  ;;  %v77_v29 = vld [vmem:[#allocation2 + $0xf8] sm:$0xff]  ;;  %v80_v30 = vld [vmem:[#allocation2 + $0x110] sm:$0xff]  ;;  %v164_v34 = vadd.f32 %v68_v26, %v65_v25  ;;  %v185_v35 = vadd.f32 %v74_v28, %v71_v27  ;;  %v83_v36 = vld [vmem:[#allocation2 + $0x128] sm:$0xff]  ;;  %v102_v41 = vrot.slane %v101_v31, 4 }
  0x4c   :  { %685 = vmatpush1.bf16.msra.mxu1 %v684_v32  ;;  %v122_v32 = vadd.f32 %v56_v22, %v53_v21  ;;  %v89_v38 = vld [vmem:[#allocation2 + $0x158] sm:$0xff]  ;;  %v92_v39 = vld [vmem:[#allocation2 + $0x170] sm:$0xff]  ;;  %v206_v40 = vadd.f32 %v80_v30, %v77_v29  ;;  %v144_v43 = vrot.slane %v143_v33, 4  ;;  %v51_v13 = vld [vmem:[#allocation2 + $0x28] sm:$0xff] }
  0x4d   :  { %687 = vmatprep.subr.bf16.mxu1 %v686_v37  ;;  %v86_v37 = vld [vmem:[#allocation2 + $0x140] sm:$0xff]  ;;  %v186_v45 = vrot.slane %v185_v35, 4  ;;  %v248_v47 = vadd.f32 %v92_v39, %v89_v38  ;;  %v103_v49 = vadd.f32 %v102_v41, %v101_v31  ;;  %v48_v12 = vld [vmem:[#allocation2 + $0x10] sm:$0xff]  ;;  %v63_v20 = vld [vmem:[#allocation2 + $0x88] sm:$0xff] }
  0x4e   :  { %745 = vmatpush1.bf16.msra.mxu0 %v744_v53  ;;  %v123_v42 = vrot.slane %v122_v32, 4  ;;  %v227_v46 = vadd.f32 %v86_v37, %v83_v36  ;;  %v145_v51 = vadd.f32 %v144_v43, %v143_v33  ;;  %v54_v17 = vld [vmem:[#allocation2 + $0x40] sm:$0xff]  ;;  %v60_v19 = vld [vmem:[#allocation2 + $0x70] sm:$0xff]  ;;  %v69_v22 = vld [vmem:[#allocation2 + $0xb8] sm:$0xff]  ;;  %v108_v43 = vadd.f32 %v51_v13, %v48_v12 }
  0x4f   :  { %v187_v53 = vadd.f32 %v186_v45, %v185_v35  ;;  %v104_v57 = vrot.slane %v103_v49, 2  ;;  %v66_v21 = vld [vmem:[#allocation2 + $0xa0] sm:$0xff]  ;;  %v72_v24 = vld [vmem:[#allocation2 + $0xd0] sm:$0xff]  ;;  %v75_v25 = vld [vmem:[#allocation2 + $0xe8] sm:$0xff] }
  0x50   :  { %689 = vmatpush1.bf16.msra.mxu1 %v688_v44  ;;  %v165_v44 = vrot.slane %v164_v34, 4  ;;  %v124_v50 = vadd.f32 %v123_v42, %v122_v32  ;;  %v146_v59 = vrot.slane %v145_v51, 2  ;;  %v78_v26 = vld [vmem:[#allocation2 + $0x100] sm:$0xff]  ;;  %v81_v27 = vld [vmem:[#allocation2 + $0x118] sm:$0xff]  ;;  %v84_v28 = vld [vmem:[#allocation2 + $0x130] sm:$0xff] }
  0x51   :  { %691 = vmatprep.subr.bf16.mxu1 %v690_v48  ;;  %v207_v48 = vrot.slane %v206_v40, 4  ;;  %v105_v1 = vadd.f32 %v104_v57, %v103_v49  ;;  %v87_v29 = vld [vmem:[#allocation2 + $0x148] sm:$0xff]  ;;  %v90_v31 = vld [vmem:[#allocation2 + $0x160] sm:$0xff]  ;;  %v93_v32 = vld [vmem:[#allocation2 + $0x178] sm:$0xff]  ;;  %v150_v49 = vadd.f32 %v63_v20, %v60_v19 }
  0x52   :  { %v166_v52 = vadd.f32 %v165_v44, %v164_v34  ;;  %v125_v58 = vrot.slane %v124_v50, 2  ;;  %v46_v33 = vld [vmem:[#allocation2] sm:$0xff]  ;;  %v49_v37 = vld [vmem:[#allocation2 + $0x18] sm:$0xff]  ;;  %v52_v38 = vld [vmem:[#allocation2 + $0x30] sm:$0xff]  ;;  %v234_v57 = vadd.f32 %v87_v29, %v84_v28 }
  0x53   :  { %v208_v56 = vadd.f32 %v207_v48, %v206_v40  ;;  %v55_v39 = vld [vmem:[#allocation2 + $0x48] sm:$0xff]  ;;  %v58_v44 = vld [vmem:[#allocation2 + $0x60] sm:$0xff]  ;;  %v61_v45 = vld [vmem:[#allocation2 + $0x78] sm:$0xff] }
  0x54   :  { %693 = vmatpush1.bf16.msra.mxu1 %v692_v54  ;;  %v228_v54 = vrot.slane %v227_v46, 4 }
  0x55   :  { %695 = vmatprep.subr.bf16.mxu1 %v694_v55  ;;  %v249_v55 = vrot.slane %v248_v47, 4  ;;  %v209_v0 = vrot.slane %v208_v56, 2 }
  0x56   :  { %v229_v62 = vadd.f32 %v228_v54, %v227_v46  ;;  %v64_v46 = vld [vmem:[#allocation2 + $0x90] sm:$0xff] }
  0x57   :  { %v250_v63 = vadd.f32 %v249_v55, %v248_v47  ;;  %v192_v55 = vadd.f32 %v75_v25, %v72_v24 }
  0x58   :  { %697 = vmatpush1.bf16.msra.mxu1 %v696_v60  ;;  %v167_v60 = vrot.slane %v166_v52, 2  ;;  %v230_v6 = vrot.slane %v229_v62, 2 }
  0x59   :  { %699 = vmatprep.subr.bf16.mxu1 %v698_v61  ;;  %v188_v61 = vrot.slane %v187_v53, 2  ;;  %v251_v7 = vrot.slane %v250_v63, 2  ;;  %v193_v12 = vrot.slane %v192_v55, 4 }
  0x5a   :  { %v168_v4 = vadd.f32 %v167_v60, %v166_v52  ;;  %v231_v16 = vadd.f32 %v230_v6, %v229_v62  ;;  %v70_v52 = vld [vmem:[#allocation2 + $0xc0] sm:$0xff]  ;;  %v79_v60 = vld [vmem:[#allocation2 + $0x108] sm:$0xff]  ;;  %v115_v62 = vadd.f32 %v55_v39, %v52_v38 }
  0x5b   :  { %v189_v5 = vadd.f32 %v188_v61, %v187_v53  ;;  %v252_v23 = vadd.f32 %v251_v7, %v250_v63  ;;  %v73_v53 = vld [vmem:[#allocation2 + $0xd8] sm:$0xff]  ;;  %v94_v61 = vadd.f32 %v49_v37, %v46_v33  ;;  %v136_v63 = vadd.f32 %v61_v45, %v58_v44 }
  0x5c   :  { %701 = vmatpush1.bf16.msra.mxu1 %v700_v2  ;;  %v126_v2 = vadd.f32 %v125_v58, %v124_v50  ;;  %v232_v42 = vrot.slane %v231_v16, 1  ;;  %v171_v50 = vadd.f32 %v69_v22, %v66_v21  ;;  %v255_v58 = vadd.f32 %v93_v32, %v90_v31 }
  0x5d   :  { %703 = vmatprep.subr.bf16.mxu1 %v702_v3  ;;  %v147_v3 = vadd.f32 %v146_v59, %v145_v51  ;;  %v253_v47 = vrot.slane %v252_v23, 1  ;;  %v67_v51 = vld [vmem:[#allocation2 + $0xa8] sm:$0xff]  ;;  %v76_v59 = vld [vmem:[#allocation2 + $0xf0] sm:$0xff]  ;;  %v151_v7 = vrot.slane %v150_v49, 4  ;;  %v137_v19 = vrot.slane %v136_v63, 4 }
  0x5e   :  { %v127_v10 = vrot.slane %v126_v2, 1  ;;  %v194_v28 = vadd.f32 %v193_v12, %v192_v55 }
  0x5f   :  { %v148_v11 = vrot.slane %v147_v3, 1  ;;  %v138_v38 = vadd.f32 %v137_v19, %v136_v63 }
  0x60   :  { %705 = vmatpush1.bf16.msra.mxu1 %v704_v8  ;;  %v210_v8 = vadd.f32 %v209_v0, %v208_v56  ;;  %v895_v35 = vadd.f32 %v127_v10, %v126_v2  ;;  %v213_v56 = vadd.f32 %v81_v27, %v78_v26  ;;  %v905_v0 = vadd.f32 %v232_v42, %v231_v16  ;;  %v82_v2 = vld [vmem:[#allocation2 + $0x120] sm:$0xff]  ;;  %v88_v10 = vld [vmem:[#allocation2 + $0x150] sm:$0xff] }
  0x61   :  { %707 = vmatprep.subr.bf16.mxu1 %v706_v9  ;;  %v106_v9 = vrot.slane %v105_v1, 1  ;;  %v897_v36 = vadd.f32 %v148_v11, %v147_v3  ;;  %v157_v3 = vadd.f32 %v67_v51, %v64_v46  ;;  %v91_v11 = vld [vmem:[#allocation2 + $0x168] sm:$0xff]  ;;  %v116_v16 = vrot.slane %v115_v62, 4 }
  0x62   :  { %v211_v30 = vrot.slane %v210_v8, 1  ;;  %v214_v13 = vrot.slane %v213_v56, 4  ;;  %v241_v24 = vadd.f32 %v91_v11, %v88_v10  ;;  %v152_v26 = vadd.f32 %v151_v7, %v150_v49 }
  0x63   :  { %v893_v34 = vadd.f32 %v106_v9, %v105_v1  ;;  %v109_v1 = vrot.slane %v108_v43, 4  ;;  %v85_v9 = vld [vmem:[#allocation2 + $0x138] sm:$0xff]  ;;  %v158_v20 = vrot.slane %v157_v3, 4  ;;  %v117_v37 = vadd.f32 %v116_v16, %v115_v62 }
  0x64   :  { %709 = vmatpush1.bf16.msra.mxu1 %v708_v14  ;;  %v169_v14 = vrot.slane %v168_v4, 1  ;;  %v903_v54 = vadd.f32 %v211_v30, %v210_v8  ;;  %v172_v8 = vrot.slane %v171_v50, 4  ;;  %v220_v22 = vadd.f32 %v85_v9, %v82_v2 }
  0x65   :  { %711 = vmatprep.subr.bf16.mxu1 %v710_v15  ;;  %v190_v15 = vrot.slane %v189_v5, 1  ;;  %v215_v29 = vadd.f32 %v214_v13, %v213_v56  ;;  %v159_v39 = vadd.f32 %v158_v20, %v157_v3  ;;  %v242_v45 = vrot.slane %v241_v24, 4 }
  0x66   :  { %v899_v40 = vadd.f32 %v169_v14, %v168_v4  ;;  %v178_v4 = vadd.f32 %v73_v53, %v70_v52  ;;  %v235_v14 = vrot.slane %v234_v57, 4  ;;  %v173_v27 = vadd.f32 %v172_v8, %v171_v50 }
  0x67   :  { %v901_v41 = vadd.f32 %v190_v15, %v189_v5  ;;  %v907_v5 = vadd.f32 %v253_v47, %v252_v23  ;;  %v199_v15 = vadd.f32 %v79_v60, %v76_v59  ;;  %v110_v23 = vadd.f32 %v109_v1, %v108_v43 }
  0x68   :  { %713 = vmatpush1.bf16.msra.mxu1 %v712_v18  ;;  %v57_v18 = vld [vmem:[#allocation2 + $0x58] sm:$0xff]  ;;  %v179_v21 = vrot.slane %v178_v4, 4  ;;  %v236_v30 = vadd.f32 %v235_v14, %v234_v57  ;;  %v221_v44 = vrot.slane %v220_v22, 4  ;;  %v153_v51 = vrot.slane %v152_v26, 2 }
  0x69   :  { %v129_v48 = vadd.f32 %v57_v18, %v54_v17  ;;  %v256_v17 = vrot.slane %v255_v58, 4  ;;  %v95_v18 = vrot.slane %v94_v61, 4  ;;  %v200_v31 = vrot.slane %v199_v15, 4 }
  0x6a   :  { %v180_v42 = vadd.f32 %v179_v21, %v178_v4  ;;  %v111_v46 = vrot.slane %v110_v23, 2  ;;  %v174_v52 = vrot.slane %v173_v27, 2  ;;  %v195_v43 = vrot.slane %v194_v28, 2 }
  0x6b   :  { %v130_v6 = vrot.slane %v129_v48, 4  ;;  %v257_v32 = vadd.f32 %v256_v17, %v255_v58  ;;  %v96_v33 = vadd.f32 %v95_v18, %v94_v61  ;;  %v237_v49 = vrot.slane %v236_v30, 2 }
  0x6c   :  { %v201_v50 = vadd.f32 %v200_v31, %v199_v15  ;;  %v118_v56 = vrot.slane %v117_v37, 2  ;;  %v139_v57 = vrot.slane %v138_v38, 2  ;;  %v160_v58 = vrot.slane %v159_v39, 2 }
  0x6d   :  { %v131_v25 = vadd.f32 %v130_v6, %v129_v48  ;;  %v216_v48 = vrot.slane %v215_v29, 2  ;;  %v258_v53 = vrot.slane %v257_v32, 2  ;;  %v97_v55 = vrot.slane %v96_v33, 2 }
  0x6e   :  { %v181_v59 = vrot.slane %v180_v42, 2  ;;  %v222_v60 = vadd.f32 %v221_v44, %v220_v22  ;;  %v243_v61 = vadd.f32 %v242_v45, %v241_v24  ;;  %v112_v62 = vadd.f32 %v111_v46, %v110_v23 }
  0x6f   :  { %v132_v47 = vrot.slane %v131_v25, 2  ;;  %v154_v1 = vadd.f32 %v153_v51, %v152_v26  ;;  %v175_v2 = vadd.f32 %v174_v52, %v173_v27  ;;  %v196_v3 = vadd.f32 %v195_v43, %v194_v28 }
  0x70   :  { %v217_v4 = vadd.f32 %v216_v48, %v215_v29  ;;  %v238_v6 = vadd.f32 %v237_v49, %v236_v30  ;;  %v202_v7 = vrot.slane %v201_v50, 2  ;;  %v259_v8 = vadd.f32 %v258_v53, %v257_v32 }
  0x71   :  { %v133_v63 = vadd.f32 %v132_v47, %v131_v25  ;;  %v98_v9 = vadd.f32 %v97_v55, %v96_v33  ;;  %v119_v10 = vadd.f32 %v118_v56, %v117_v37  ;;  %v140_v11 = vadd.f32 %v139_v57, %v138_v38 }
  0x72   :  { %v161_v12 = vadd.f32 %v160_v58, %v159_v39  ;;  %v182_v13 = vadd.f32 %v181_v59, %v180_v42  ;;  %v223_v14 = vrot.slane %v222_v60, 2  ;;  %v244_v15 = vrot.slane %v243_v61, 2 }
  0x73   :  { %v113_v17 = vrot.slane %v112_v62, 1  ;;  %v134_v18 = vrot.slane %v133_v63, 1  ;;  %v155_v16 = vrot.slane %v154_v1, 1  ;;  %v176_v19 = vrot.slane %v175_v2, 1 }
  0x74   :  { %v197_v20 = vrot.slane %v196_v3, 1  ;;  %v218_v21 = vrot.slane %v217_v4, 1  ;;  %v239_v22 = vrot.slane %v238_v6, 1  ;;  %v203_v24 = vadd.f32 %v202_v7, %v201_v50 }
  0x75   :  { %v260_v23 = vrot.slane %v259_v8, 1  ;;  %v99_v25 = vrot.slane %v98_v9, 1  ;;  %v120_v26 = vrot.slane %v119_v10, 1  ;;  %v141_v27 = vrot.slane %v140_v11, 1 }
  0x76   :  { %v162_v28 = vrot.slane %v161_v12, 1  ;;  %v183_v29 = vrot.slane %v182_v13, 1  ;;  %v224_v30 = vadd.f32 %v223_v14, %v222_v60  ;;  %v245_v31 = vadd.f32 %v244_v15, %v243_v61 }
  0x77   :  { %v114_v32 = vadd.f32 %v113_v17, %v112_v62  ;;  %v135_v33 = vadd.f32 %v134_v18, %v133_v63  ;;  %v156_v37 = vadd.f32 %v155_v16, %v154_v1  ;;  %v177_v38 = vadd.f32 %v176_v19, %v175_v2 }
  0x78   :  { %v198_v39 = vadd.f32 %v197_v20, %v196_v3  ;;  %v219_v42 = vadd.f32 %v218_v21, %v217_v4  ;;  %v240_v44 = vadd.f32 %v239_v22, %v238_v6  ;;  %v204_v45 = vrot.slane %v203_v24, 1 }
  0x79   :  { %v261_v46 = vadd.f32 %v260_v23, %v259_v8  ;;  %v909_v47 = vadd.f32 %v99_v25, %v98_v9  ;;  %v121_v51 = vadd.f32 %v120_v26, %v119_v10  ;;  %v142_v52 = vadd.f32 %v141_v27, %v140_v11 }
  0x7a   :  { %v163_v48 = vadd.f32 %v162_v28, %v161_v12  ;;  %v184_v49 = vadd.f32 %v183_v29, %v182_v13  ;;  %v225_v50 = vrot.slane %v224_v30, 1  ;;  %v246_v53 = vrot.slane %v245_v31, 1 }
  0x7b   :  { %v205_v62 = vadd.f32 %v204_v45, %v203_v24 }
  0x7c   :  { %v226_v7 = vadd.f32 %v225_v50, %v224_v30  ;;  %v247_v8 = vadd.f32 %v246_v53, %v245_v31 }
  0xa8   :  { %v911_v43 = vpop.permute.xlu0 %265 }
  0xa9   :  { %v267_v55 = vrot.slane %v911_v43, 1  ;;  %v268_v56 = vrot.slane %v911_v43, 2  ;;  %v269_v57 = vrot.slane %v911_v43, 3  ;;  %v270_v58 = vrot.slane %v911_v43, 4 }
  0xaa   :  { %v271_v59 = vrot.slane %v911_v43, 5  ;;  %v272_v60 = vrot.slane %v911_v43, 6  ;;  %v273_v61 = vrot.slane %v911_v43, 7  ;;  %v283_v9 = vmul.f32 %v911_v43, %v893_v34 }
  0xab   :  { %v286_v63 = vmul.f32 %v267_v55, %v895_v35  ;;  %v289_v1 = vmul.f32 %v268_v56, %v897_v36  ;;  %v292_v2 = vmul.f32 %v269_v57, %v899_v40  ;;  %v295_v3 = vmul.f32 %v270_v58, %v901_v41 }
  0xac   :  { %v298_v4 = vmul.f32 %v271_v59, %v903_v54  ;;  %v301_v6 = vmul.f32 %v272_v60, %v905_v0  ;;  %v304_v10 = vmul.f32 %v273_v61, %v907_v5  ;;  %v284_v36 = vmul.f32 %v911_v43, %v114_v32 }
  0xad   :  { %v459_v11 = vrot.slane %v286_v63, 7  ;;  %v461_v12 = vrot.slane %v289_v1, 6  ;;  %v463_v35 = vrot.slane %v292_v2, 5  ;;  %v465_v13 = vrot.slane %v295_v3, 4 }
  0xae   :  { %v287_v40 = vmul.f32 %v267_v55, %v135_v33  ;;  %v290_v14 = vmul.f32 %v268_v56, %v156_v37  ;;  %v293_v54 = vmul.f32 %v269_v57, %v177_v38  ;;  %v296_v15 = vmul.f32 %v270_v58, %v198_v39 }
  0xaf   :  { %v460_v41 = vsel %vm439_vm0, %v459_v11, %v283_v9  ;;  %v467_v17 = vrot.slane %v298_v4, 3  ;;  %v469_v18 = vrot.slane %v301_v6, 2  ;;  %v299_v16 = vmul.f32 %v271_v59, %v219_v42  ;;  %v402_v9 = vld [vmem:[%s971_s3] sm:$0x3] }
  0xb0   :  { %v462_v0 = vsel %vm442_vm1, %v461_v12, %v460_v41  ;;  %v302_v5 = vmul.f32 %v272_v60, %v240_v44  ;;  %v473_v19 = vrot.slane %v287_v40, 7  ;;  %v475_v20 = vrot.slane %v290_v14, 6 }
  0xb1   :  { %v464_v34 = vsel %vm445_vm2, %v463_v35, %v462_v0  ;;  %v471_v22 = vrot.slane %v304_v10, 1  ;;  %v305_v24 = vmul.f32 %v273_v61, %v261_v46  ;;  %v477_v23 = vrot.slane %v293_v54, 5 }
  0xb2   :  { %v466_v21 = vsel %vm448_vm3, %v465_v13, %v464_v34  ;;  %v474_v26 = vsel %vm439_vm0, %v473_v19, %v284_v36  ;;  %v479_v27 = vrot.slane %v296_v15, 4  ;;  %v481_v28 = vrot.slane %v299_v16, 3 }
  0xb3   :  { %v468_v25 = vsel %vm451_vm4, %v467_v17, %v466_v21  ;;  %v476_v30 = vsel %vm442_vm1, %v475_v20, %v474_v26  ;;  %v285_v31 = vmul.f32 %v267_v55, %v121_v51  ;;  %v288_v32 = vmul.f32 %v268_v56, %v142_v52 }
  0xb4   :  { %v470_v29 = vsel %vm454_vm5, %v469_v18, %v468_v25  ;;  %v478_v37 = vsel %vm445_vm2, %v477_v23, %v476_v30  ;;  %v483_v38 = vrot.slane %v302_v5, 2  ;;  %v291_v39 = vmul.f32 %v269_v57, %v163_v48 }
  0xb5   :  { %v472_v33 = vsel %vm457_vm6, %v471_v22, %v470_v29  ;;  %v480_v42 = vsel %vm448_vm3, %v479_v27, %v478_v37  ;;  %v485_v44 = vrot.slane %v305_v24, 1  ;;  %v282_v45 = vmul.f32 %v911_v43, %v909_v47 }
  0xb6   :  { %554 = vmatprep.mubr.f32.mxu1 %v472_v33  ;;  %v294_v46 = vmul.f32 %v270_v58, %v184_v49  ;;  %v482_v50 = vsel %vm451_vm4, %v481_v28, %v480_v42  ;;  %v297_v53 = vmul.f32 %v271_v59, %v205_v62  ;;  %v438_v63 = vrot.slane %v285_v31, 7 }
  0xb7   :  { %v441_v51 = vrot.slane %v288_v32, 6  ;;  %v484_v52 = vsel %vm454_vm5, %v483_v38, %v482_v50  ;;  %v300_v55 = vmul.f32 %v272_v60, %v226_v7  ;;  %v303_v1 = vmul.f32 %v273_v61, %v247_v8 }
  0xb8   :  { %v486_v56 = vsel %vm457_vm6, %v485_v44, %v484_v52  ;;  %v440_v48 = vsel %vm439_vm0, %v438_v63, %v282_v45  ;;  %v444_v57 = vrot.slane %v291_v39, 5  ;;  %v447_v3 = vrot.slane %v294_v46, 4 }
  0xb9   :  { %626 = vmatmul.mubr.f32.vlgmr.msra.gmra.mrb[0].mxu0 %v486_v56  ;;  %v443_v2 = vsel %vm442_vm1, %v441_v51, %v440_v48  ;;  %v450_v43 = vrot.slane %v297_v53, 3  ;;  %v453_v58 = vrot.slane %v300_v55, 2  ;;  %v456_v62 = vrot.slane %v303_v1, 1 }
  0xba   :  { %v446_v47 = vsel %vm445_vm2, %v444_v57, %v443_v2  ;;  %v404_v4 = vlaneseq }
  0xbb   :  { %v449_v49 = vsel %vm448_vm3, %v447_v3, %v446_v47 }
  0xbc   :  { %v452_v59 = vsel %vm451_vm4, %v450_v43, %v449_v49  ;;  %v405_v6 = vshrl.u32 %v404_v4, 7 }
  0xbd   :  { %v455_v60 = vsel %vm454_vm5, %v453_v58, %v452_v59 }
  0xbe   :  { %v458_v61 = vsel %vm457_vm6, %v456_v62, %v455_v60  ;;  %v406_v7 = vsub.s32 0, %v405_v6  ;;  %v410_v10 = vsub.s32 1, %v405_v6 }
  0xbf   :  { %555 = vmatmul.mubr.f32.vlgmr.msra.gmra.mrb[0].mxu1 %v458_v61 }
  0xc0   :  { %v407_v12 = vrot.slane %v402_v9, %v406_v7  ;;  %v411_v35 = vrot.slane %v402_v9, %v410_v10 }
 0x18c   :  { %v627_v8 = vpop.f32.mrb[0].mxu0 }
 0x18d   :  { %v629_v11 = vpop.f32.mrb[1].mxu0 }
 0x192   :  { %v556_v13 = vpop.f32.mrb[0].mxu1 }
 0x193   :  { %v557_v36 = vadd.f32 %v556_v13, %v407_v12  ;;  %v558_v40 = vpop.f32.mrb[1].mxu1 }
 0x194   :  { %v559_v41 = vadd.f32 %v558_v40, %v411_v35 }
 0x195   :  { %v628_v14 = vadd.f32 %v627_v8, %v557_v36 }
 0x196   :  { %v630_v54 = vadd.f32 %v629_v11, %v559_v41 }
 0x197   :  { %632 = vst [vmem:[#allocation7] sm:$0xff] %v628_v14 }
 0x198   :  { %633 = vst [vmem:[#allocation7 + $0x8] sm:$0xff] %v630_v54 }
 0x199   :  { %815 = shalt.err (!%p812_p6)
}
 0x19a   :  { %s816_s22 = scalar_lea.hbm %s972_s4, 256 }
 0x19b   :  { %p817_p7 = scmp.ne.s32.totalorder %s972_s4, %s816_s22  ;;  %p820_p8 = scmp.lt.u32.totalorder %s816_s22, %s972_s4 }
 0x19d   :  { %p822_p9 = pnand %p820_p8, %p817_p7 }
 0x19f   :  { %825 = shalt.err (!%p822_p9)
}
 0x1a0   :  { %643 = dma.vmem_to_hbm [thread:$0]  %s641_s19, 256, %s972_s4, [#allocation4]  }
 0x1a1   :  { %830 = dma.done.wait [#allocation4], 256  }
 0x1a2   :  { %831 = vsyncadd [#allocation4], 4294967040 }
 0x1a3   :  { %647 = vsyncpa [#allocation3], 1 }
 0x1a4   :  { %648 = vsyncpa [#allocation6], 1 }
 0x1a5   :  { %649 = vsyncpa [#allocation4], 1 }

</bundles_post_ra>
